<compile_context>
chip_gen: v5e
topology: v5e:2x2
jax: 0.10.0
libtpu: 0.0.40
codegen_flags: <defaults>
</compile_context>

<pallas_src>
import functools

import jax
import jax.numpy as jnp
from jax.experimental import pallas as pl
from jax.experimental.pallas import tpu as pltpu

N_CLASSES = 2
DIMS = (20, 32, 32)           # dims=[20, 32, 32] from the module default
COS_EPS = 1e-8                # F.cosine_similarity default eps
OUT_PAD = 128                 # lane-dense output slab width


def man_kernel(xall_ref, y_ref, w1_ref, b1_ref, w2_ref, b2_ref, out_ref,
               *, bt, n_classes, pad_out):
    """Single-block kernel: everything lives in VMEM (shapes are tiny)."""

    # --- fused MLP over test+train rows (one pair of MXU pushes) ----------
    x_all = xall_ref[...]                                          # [Bt+Bn, D]
    h = jnp.dot(x_all, w1_ref[...], preferred_element_type=jnp.float32) + b1_ref[...]
    h = jnp.maximum(h, 0.0)                                        # ReLU
    embd = jnp.dot(h, w2_ref[...], preferred_element_type=jnp.float32) + b2_ref[...]

    # --- L2-normalize embeddings (rsqrt on EUP), then split ----------------
    # Per-row eps clamp; equivalent to the max(||a||*||b||, eps) clamp for all
    # non-degenerate rows (norms here are O(sqrt(H))).
    sq = jnp.sum(embd * embd, axis=1, keepdims=True)               # [Bt+Bn, 1]
    inv_norm = jax.lax.rsqrt(jnp.maximum(sq, COS_EPS * COS_EPS))
    embd_n = embd * inv_norm
    test_n = embd_n[:bt]                                           # [Bt, H]
    train_n = embd_n[bt:]                                          # [Bn, H]

    # --- cosine similarity = plain dot of normalized embeddings -----------
    sims = jax.lax.dot_general(
        test_n, train_n,
        dimension_numbers=(((1,), (1,)), ((), ())),
        preferred_element_type=jnp.float32)                        # [Bt, Bn]

    # --- softmax over the support axis, denominator deferred --------------
    m = jnp.max(sims, axis=1, keepdims=True)
    e = jnp.exp(sims - m)                                          # unnormalized
    row_sum = jnp.sum(e, axis=1, keepdims=True)                    # [Bt, 1]

    # --- label mixing via select + reduce (no one-hot, no N=2 matmul) -----
    y_row = y_ref[...]                                             # [1, Bn] int32
    rest = jnp.zeros((bt, 1), jnp.float32)
    p_cols = []
    for c in range(1, n_classes):
        mask = (y_row == c).astype(jnp.float32)                    # [1, Bn]
        pc = jnp.sum(e * mask, axis=1, keepdims=True)              # [Bt, 1]
        p_cols.append(pc)
        rest = rest + pc
    p_cols = [row_sum - rest] + p_cols                             # class 0 = remainder

    inv_sum = pl.reciprocal(row_sum, approx=True)                  # EUP, ~free

    # --- lane-dense padded output slab -------------------------------------
    lane = jax.lax.broadcasted_iota(jnp.int32, (bt, pad_out), 1)
    out = jnp.zeros((bt, pad_out), jnp.float32)
    for c in range(n_classes):
        out = out + jnp.where(lane == c, p_cols[c] * inv_sum, 0.0)
    out_ref[...] = out


def man_forward(x_test, x_train, y_train, params, n_classes=N_CLASSES):
    w1, b1, w2, b2 = params
    bt, _ = x_test.shape
    bn, _ = x_train.shape
    h1 = w1.shape[1]
    h2 = w2.shape[1]

    x_all = jnp.concatenate([x_test, x_train], axis=0)             # [Bt+Bn, D]
    y_row = y_train.astype(jnp.int32).reshape(1, bn)               # lane-major labels
    b1_2d = b1.reshape(1, h1)
    b2_2d = b2.reshape(1, h2)

    full = lambda shape: pl.BlockSpec(shape, lambda i: (0,) * len(shape))

    kernel = pl.pallas_call(
        functools.partial(man_kernel, bt=bt, n_classes=n_classes, pad_out=OUT_PAD),
        out_shape=jax.ShapeDtypeStruct((bt, OUT_PAD), jnp.float32),
        grid=(1,),
        in_specs=[
            full(x_all.shape),    # concatenated test+train samples
            full(y_row.shape),    # labels as [1, Bn] int32
            full(w1.shape),
            full(b1_2d.shape),
            full(w2.shape),
            full(b2_2d.shape),
        ],
        out_specs=full((bt, OUT_PAD)),
        compiler_params=pltpu.CompilerParams(
            dimension_semantics=("arbitrary",)),
    )
    padded = kernel(x_all, y_row, w1, b1_2d, w2, b2_2d)
    return padded[:, :n_classes]


def man_reference(x_test, x_train, y_train, params, n_classes=N_CLASSES):
    """Pure-JAX reference mirroring the PyTorch forward."""
    w1, b1, w2, b2 = params
    mlp = lambda x: jnp.maximum(x @ w1 + b1, 0.0) @ w2 + b2
    te, tr = mlp(x_test), mlp(x_train)
    te_n = jnp.linalg.norm(te, axis=1, keepdims=True)
    tr_n = jnp.linalg.norm(tr, axis=1, keepdims=True)
    sims = (te @ tr.T) / jnp.maximum(te_n @ tr_n.T, COS_EPS)
    proba = jax.nn.softmax(sims, axis=1)
    one_hot = jax.nn.one_hot(y_train, n_classes, dtype=jnp.float32)
    return proba @ one_hot


def init_params(key, dims=DIMS):
    d_in, h1, h2 = dims
    k1, k2 = jax.random.split(key)
    # Deterministic synthetic init (scaled normal); biases zero.
    w1 = jax.random.normal(k1, (d_in, h1), jnp.float32) / jnp.sqrt(d_in)
    b1 = jnp.zeros((h1,), jnp.float32)
    w2 = jax.random.normal(k2, (h1, h2), jnp.float32) / jnp.sqrt(h1)
    b2 = jnp.zeros((h2,), jnp.float32)
    return w1, b1, w2, b2


if __name__ == "__main__":
    key = jax.random.PRNGKey(0)
    kp, kx, ks, ky = jax.random.split(key, 4)

    B_TEST, B_TRAIN = 8, 8
    params = init_params(kp)

    x_test = jax.random.normal(kx, (B_TEST, DIMS[0]), jnp.float32)
    x_train = jax.random.normal(ks, (B_TRAIN, DIMS[0]), jnp.float32)
    y_train = jax.random.randint(ky, (B_TRAIN,), 0, N_CLASSES, jnp.int32)

    preds = man_forward(x_test, x_train, y_train, params)
    preds = jax.block_until_ready(preds)

    ref = jax.block_until_ready(man_reference(x_test, x_train, y_train, params))
    assert preds.shape == (B_TEST, N_CLASSES)
    assert jnp.allclose(preds, ref, atol=1e-2, rtol=1e-2), (preds, ref)

    print("KERNEL_OK")
</pallas_src>

<mosaic_0001>
module attributes {stable_mosaic.version = 11 : i64} {
  func.func @man_kernel(%arg0: i32, %arg1: memref<16x20xf32, #tpu.memory_space<vmem>>, %arg2: memref<1x8xi32, #tpu.memory_space<vmem>>, %arg3: memref<20x32xf32, #tpu.memory_space<vmem>>, %arg4: memref<1x32xf32, #tpu.memory_space<vmem>>, %arg5: memref<32x32xf32, #tpu.memory_space<vmem>>, %arg6: memref<1x32xf32, #tpu.memory_space<vmem>>, %arg7: memref<8x128xf32, #tpu.memory_space<vmem>>) attributes {dimension_semantics = [#tpu.dimension_semantics<arbitrary>], iteration_bounds = array<i64: 1>, scalar_prefetch = 0 : i64, scratch_operands = 0 : i64, tpu.core_type = #tpu.core_type<tc>, window_params = [{pipeline_mode = #tpu.pipeline_mode<synchronous>, transform_indices = @transform_0, window_bounds = array<i64: 16, 20>}, {pipeline_mode = #tpu.pipeline_mode<synchronous>, transform_indices = @transform_1, window_bounds = array<i64: 1, 8>}, {pipeline_mode = #tpu.pipeline_mode<synchronous>, transform_indices = @transform_2, window_bounds = array<i64: 20, 32>}, {pipeline_mode = #tpu.pipeline_mode<synchronous>, transform_indices = @transform_3, window_bounds = array<i64: 1, 32>}, {pipeline_mode = #tpu.pipeline_mode<synchronous>, transform_indices = @transform_4, window_bounds = array<i64: 32, 32>}, {pipeline_mode = #tpu.pipeline_mode<synchronous>, transform_indices = @transform_5, window_bounds = array<i64: 1, 32>}, {pipeline_mode = #tpu.pipeline_mode<synchronous>, transform_indices = @transform_6, window_bounds = array<i64: 8, 128>}]} {
    %c0 = arith.constant 0 : index
    %c0_0 = arith.constant 0 : index
    %0 = vector.load %arg1[%c0, %c0_0] : memref<16x20xf32, #tpu.memory_space<vmem>>, vector<16x20xf32>
    %c0_1 = arith.constant 0 : index
    %c0_2 = arith.constant 0 : index
    %1 = vector.load %arg3[%c0_1, %c0_2] : memref<20x32xf32, #tpu.memory_space<vmem>>, vector<20x32xf32>
    %cst = arith.constant dense<0.000000e+00> : vector<16x32xf32>
    %2 = tpu.matmul %0, %1, %cst {dimension_numbers = #tpu.dot_dimension_numbers<[1], [0], [0], [1], [0, 0, 1, 1], [], []>} : vector<16x20xf32>, vector<20x32xf32>, vector<16x32xf32> -> vector<16x32xf32>
    %c0_3 = arith.constant 0 : index
    %c0_4 = arith.constant 0 : index
    %3 = vector.load %arg4[%c0_3, %c0_4] : memref<1x32xf32, #tpu.memory_space<vmem>>, vector<1x32xf32>
    %4 = vector.broadcast %3 : vector<1x32xf32> to vector<16x32xf32>
    %5 = arith.addf %2, %4 : vector<16x32xf32>
    %cst_5 = arith.constant 0.000000e+00 : f32
    %6 = vector.broadcast %cst_5 : f32 to vector<16x32xf32>
    %7 = arith.maximumf %5, %6 : vector<16x32xf32>
    %c0_6 = arith.constant 0 : index
    %c0_7 = arith.constant 0 : index
    %8 = vector.load %arg5[%c0_6, %c0_7] : memref<32x32xf32, #tpu.memory_space<vmem>>, vector<32x32xf32>
    %cst_8 = arith.constant dense<0.000000e+00> : vector<16x32xf32>
    %9 = tpu.matmul %7, %8, %cst_8 {dimension_numbers = #tpu.dot_dimension_numbers<[1], [0], [0], [1], [0, 0, 1, 1], [], []>} : vector<16x32xf32>, vector<32x32xf32>, vector<16x32xf32> -> vector<16x32xf32>
    %c0_9 = arith.constant 0 : index
    %c0_10 = arith.constant 0 : index
    %10 = vector.load %arg6[%c0_9, %c0_10] : memref<1x32xf32, #tpu.memory_space<vmem>>, vector<1x32xf32>
    %11 = vector.broadcast %10 : vector<1x32xf32> to vector<16x32xf32>
    %12 = arith.addf %9, %11 : vector<16x32xf32>
    %13 = arith.mulf %12, %12 : vector<16x32xf32>
    %cst_11 = arith.constant dense<0.000000e+00> : vector<16xf32>
    %14 = vector.multi_reduction <add>, %13, %cst_11 [1] : vector<16x32xf32> to vector<16xf32>
    %15 = vector.shape_cast %14 : vector<16xf32> to vector<16x1xf32>
    %cst_12 = arith.constant 1.000000e-16 : f32
    %16 = vector.broadcast %cst_12 : f32 to vector<16x1xf32>
    %17 = arith.maximumf %15, %16 : vector<16x1xf32>
    %18 = math.rsqrt %17 : vector<16x1xf32>
    %19 = vector.broadcast %18 : vector<16x1xf32> to vector<16x32xf32>
    %20 = arith.mulf %12, %19 : vector<16x32xf32>
    %21 = vector.extract_strided_slice %20 {offsets = [0, 0], sizes = [8, 32], strides = [1, 1]} : vector<16x32xf32> to vector<8x32xf32>
    %22 = vector.extract_strided_slice %20 {offsets = [8, 0], sizes = [8, 32], strides = [1, 1]} : vector<16x32xf32> to vector<8x32xf32>
    %cst_13 = arith.constant dense<0.000000e+00> : vector<8x8xf32>
    %23 = tpu.matmul %21, %22, %cst_13 {dimension_numbers = #tpu.dot_dimension_numbers<[1], [1], [0], [0], [0, 0, 1, 0], [], []>} : vector<8x32xf32>, vector<8x32xf32>, vector<8x8xf32> -> vector<8x8xf32>
    %cst_14 = arith.constant dense<0xFF800000> : vector<8xf32>
    %24 = vector.multi_reduction <maximumf>, %23, %cst_14 [1] : vector<8x8xf32> to vector<8xf32>
    %25 = vector.shape_cast %24 : vector<8xf32> to vector<8x1xf32>
    %26 = vector.broadcast %25 : vector<8x1xf32> to vector<8x8xf32>
    %27 = arith.subf %23, %26 : vector<8x8xf32>
    %28 = math.exp %27 : vector<8x8xf32>
    %cst_15 = arith.constant dense<0.000000e+00> : vector<8xf32>
    %29 = vector.multi_reduction <add>, %28, %cst_15 [1] : vector<8x8xf32> to vector<8xf32>
    %30 = vector.shape_cast %29 : vector<8xf32> to vector<8x1xf32>
    %c0_16 = arith.constant 0 : index
    %c0_17 = arith.constant 0 : index
    %31 = vector.load %arg2[%c0_16, %c0_17] : memref<1x8xi32, #tpu.memory_space<vmem>>, vector<1x8xi32>
    %cst_18 = arith.constant 0.000000e+00 : f32
    %32 = vector.broadcast %cst_18 : f32 to vector<8x1xf32>
    %c1_i32 = arith.constant 1 : i32
    %33 = vector.broadcast %c1_i32 : i32 to vector<1x8xi32>
    %34 = arith.cmpi eq, %31, %33 : vector<1x8xi32>
    %35 = arith.extui %34 : vector<1x8xi1> to vector<1x8xi32>
    %36 = arith.sitofp %35 : vector<1x8xi32> to vector<1x8xf32>
    %37 = vector.broadcast %36 : vector<1x8xf32> to vector<8x8xf32>
    %38 = arith.mulf %28, %37 : vector<8x8xf32>
    %cst_19 = arith.constant dense<0.000000e+00> : vector<8xf32>
    %39 = vector.multi_reduction <add>, %38, %cst_19 [1] : vector<8x8xf32> to vector<8xf32>
    %40 = vector.shape_cast %39 : vector<8xf32> to vector<8x1xf32>
    %41 = arith.addf %32, %40 : vector<8x1xf32>
    %42 = arith.subf %30, %41 : vector<8x1xf32>
    %43 = tpu.reciprocal %30 {approx = true} : vector<8x1xf32> -> vector<8x1xf32>
    %44 = tpu.iota {dimensions = array<i32: 1>} : vector<8x128xi32>
    %cst_20 = arith.constant 0.000000e+00 : f32
    %45 = vector.broadcast %cst_20 : f32 to vector<8x128xf32>
    %c0_i32 = arith.constant 0 : i32
    %46 = vector.broadcast %c0_i32 : i32 to vector<8x128xi32>
    %47 = arith.cmpi eq, %44, %46 : vector<8x128xi32>
    %48 = arith.mulf %42, %43 : vector<8x1xf32>
    %cst_21 = arith.constant 0.000000e+00 : f32
    %49 = vector.shape_cast %48 : vector<8x1xf32> to vector<8x1xf32>
    %50 = vector.broadcast %49 : vector<8x1xf32> to vector<8x128xf32>
    %51 = vector.broadcast %cst_21 : f32 to vector<8x128xf32>
    %52 = arith.select %47, %50, %51 : vector<8x128xi1>, vector<8x128xf32>
    %53 = arith.addf %45, %52 : vector<8x128xf32>
    %c1_i32_22 = arith.constant 1 : i32
    %54 = vector.broadcast %c1_i32_22 : i32 to vector<8x128xi32>
    %55 = arith.cmpi eq, %44, %54 : vector<8x128xi32>
    %56 = arith.mulf %40, %43 : vector<8x1xf32>
    %cst_23 = arith.constant 0.000000e+00 : f32
    %57 = vector.shape_cast %56 : vector<8x1xf32> to vector<8x1xf32>
    %58 = vector.broadcast %57 : vector<8x1xf32> to vector<8x128xf32>
    %59 = vector.broadcast %cst_23 : f32 to vector<8x128xf32>
    %60 = arith.select %55, %58, %59 : vector<8x128xi1>, vector<8x128xf32>
    %61 = arith.addf %53, %60 : vector<8x128xf32>
    %c0_24 = arith.constant 0 : index
    %c0_25 = arith.constant 0 : index
    %62 = vector.load %arg7[%c0_24, %c0_25] : memref<8x128xf32, #tpu.memory_space<vmem>>, vector<8x128xf32>
    tpu.vector_store %arg7[%c0_24, %c0_25], %61 {strides = array<i32>} : memref<8x128xf32, #tpu.memory_space<vmem>>, vector<8x128xf32>,
    return
  }
  func.func @transform_0(%arg0: i32) -> (i32, i32) {
    %c0_i32 = arith.constant 0 : i32
    %c0_i32_0 = arith.constant 0 : i32
    %c0_i32_1 = arith.constant 0 : i32
    return %c0_i32, %c0_i32_0 : i32, i32
  }
  func.func @transform_1(%arg0: i32) -> (i32, i32) {
    %c0_i32 = arith.constant 0 : i32
    %c0_i32_0 = arith.constant 0 : i32
    %c0_i32_1 = arith.constant 0 : i32
    return %c0_i32, %c0_i32_0 : i32, i32
  }
  func.func @transform_2(%arg0: i32) -> (i32, i32) {
    %c0_i32 = arith.constant 0 : i32
    %c0_i32_0 = arith.constant 0 : i32
    %c0_i32_1 = arith.constant 0 : i32
    return %c0_i32, %c0_i32_0 : i32, i32
  }
  func.func @transform_3(%arg0: i32) -> (i32, i32) {
    %c0_i32 = arith.constant 0 : i32
    %c0_i32_0 = arith.constant 0 : i32
    %c0_i32_1 = arith.constant 0 : i32
    return %c0_i32, %c0_i32_0 : i32, i32
  }
  func.func @transform_4(%arg0: i32) -> (i32, i32) {
    %c0_i32 = arith.constant 0 : i32
    %c0_i32_0 = arith.constant 0 : i32
    %c0_i32_1 = arith.constant 0 : i32
    return %c0_i32, %c0_i32_0 : i32, i32
  }
  func.func @transform_5(%arg0: i32) -> (i32, i32) {
    %c0_i32 = arith.constant 0 : i32
    %c0_i32_0 = arith.constant 0 : i32
    %c0_i32_1 = arith.constant 0 : i32
    return %c0_i32, %c0_i32_0 : i32, i32
  }
  func.func @transform_6(%arg0: i32) -> (i32, i32) {
    %c0_i32 = arith.constant 0 : i32
    %c0_i32_0 = arith.constant 0 : i32
    %c0_i32_1 = arith.constant 0 : i32
    return %c0_i32, %c0_i32_0 : i32, i32
  }
}

</mosaic_0001>

<bundles_post_ra>
// kernel: tpu_custom_call.1
= control target key start
LH: loop header
LB: loop body
LE: loop exit
PB: predicated region body
PF: predicated region fallthrough
CT: control target
= control target key end

     0   :  { %11 = vsyncpa [#allocation3], 0  ;;  %s511_s0 = inlined_call_operand.hbm [shape: f32[16,20], index: 0, kind: input, shape index: {}]   ;;  %s512_s1 = inlined_call_operand.hbm [shape: s32[1,8], index: 1, kind: input, shape index: {}]   ;;  %s513_s2 = inlined_call_operand.hbm [shape: f32[20,32], index: 2, kind: input, shape index: {}]   ;;  %s514_s3 = inlined_call_operand.vmem [shape: f32[1,32], index: 3, kind: input, shape index: {}]   ;;  %s515_s4 = inlined_call_operand.hbm [shape: f32[32,32], index: 4, kind: input, shape index: {}]   ;;  %s516_s5 = inlined_call_operand.vmem [shape: f32[1,32], index: 5, kind: input, shape index: {}]   ;;  %s517_s6 = inlined_call_operand.hbm [shape: f32[8,128], index: 6, kind: output, shape index: {}]  }
   0x1   :  { %12 = vsyncpa [#allocation6], 0 }
   0x2   :  { %13 = vsyncpa [#allocation9], 0  ;;  %s33_s23 = sshll.u32 %s512_s1, 4  ;;  %s34_s23 = int_to_ptr.hbm [resolvable:$true] %s33_s23 }
   0x3   :  { %14 = vsyncpa [#allocation4], 0  ;;  %s438_s24 = smov [#allocation5]   ;;  %s19_s28 = sshll.u32 %s511_s0, 4  ;;  %s20_s28 = int_to_ptr.hbm [resolvable:$true] %s19_s28 }
   0x4   :  { %s35_s25 = sshll.u32 %s438_s24, 4  ;;  %s439_s29 = smov [#allocation2]   ;;  %s36_s25 = int_to_ptr.vmem [resolvable:$true] %s35_s25 }
   0x5   :  { %38 = dma.hbm_to_vmem [thread:$0]  %s34_s23, 16, %s36_s25, [#allocation6]  }
   0x6   :  { %s21_s30 = sshll.u32 %s439_s29, 4  ;;  %s440_s7 = smov 128   ;;  %s22_s30 = int_to_ptr.vmem [resolvable:$true] %s21_s30 }
   0x7   :  { %s441_s8 = smov 8   ;;  %s43_s1 = sshll.u32 %s513_s2, 4  ;;  %s44_s1 = int_to_ptr.hbm [resolvable:$true] %s43_s1 }
   0x8   :  { %27 = dma.hbm_to_vmem [thread:$0]  %s20_s28, 256, %s22_s30, [#allocation3], %s440_s7, %s440_s7, %s441_s8  }
   0x9   :  { %s442_s11 = smov [#allocation7]   ;;  %s58_s0 = sshll.u32 %s515_s4, 4  ;;  %s59_s0 = int_to_ptr.hbm [resolvable:$true] %s58_s0 }
   0xa   :  { %s45_s12 = sshll.u32 %s442_s11, 4  ;;  %s443_s15 = smov [#allocation8]   ;;  %s46_s12 = int_to_ptr.vmem [resolvable:$true] %s45_s12 }
   0xb   :  { %51 = dma.hbm_to_vmem [thread:$0]  %s44_s1, 384, %s46_s12, [#allocation6], %s440_s7, %s440_s7, %s441_s8  }
   0xc   :  { %s60_s16 = sshll.u32 %s443_s15, 4  ;;  %s61_s16 = int_to_ptr.vmem [resolvable:$true] %s60_s16 }
   0xd   :  { %66 = dma.hbm_to_vmem [thread:$0]  %s59_s0, 512, %s61_s16, [#allocation9], %s440_s7, %s440_s7, %s441_s8  }
   0xe   :  { %430 = dma.done.wait [#allocation3], 256  }
   0xf   :  { %431 = vsyncadd [#allocation3], 4294967040 }
  0x10   :  { %432 = dma.done.wait [#allocation6], 400  }
  0x11   :  { %433 = vsyncadd [#allocation6], 4294966896 }
  0x12   :  { %434 = dma.done.wait [#allocation9], 512  }
  0x13   :  { %435 = vsyncadd [#allocation9], 4294966784  ;;  %vm101_vm0 = vcmask 1043456   ;;  %v89_v0 = vld [vmem:[#allocation7 + $0x10] sm:$0xf]  ;;  %v88_v1 = vld [vmem:[#allocation7 + $0x8] sm:$0xff]  ;;  %v250_v58 = vlaneseq }
  0x14   :  { %280 = vmatpush.msk.msra.mxu0 %vm101_vm0, %v89_v0  ;;  %v133_v2 = vld [vmem:[#allocation8 + $0x18] sm:$0xff]  ;;  %v87_v3 = vld [vmem:[#allocation7] sm:$0xff]  ;;  %vm94_vm1 = vcmask 162816   ;;  %v132_v6 = vld [vmem:[#allocation8 + $0x10] sm:$0xff]  ;;  %vm138_vm2 = vcmask 261120   ;;  %vm226_vm9 = vcmask 64512  }
  0x15   :  { %157 = vmatpush.msra.mxu1 %v133_v2  ;;  %288 = vmatpush.msra.mxu3 %v133_v2  ;;  %v85_v4 = vld [vmem:[#allocation2] sm:$0xff]  ;;  %v86_v5 = vld [vmem:[#allocation2 + $0x8] sm:$0xff]  ;;  %v131_v7 = vld [vmem:[#allocation8 + $0x8] sm:$0xff]  ;;  %v444_v51 = vmov 0.0   ;;  %v251_v60 = vand.u32 127, %v250_v58  ;;  %s268_s21 = sshll.u32 %s517_s6, 4  ;;  %s269_s21 = int_to_ptr.hbm [resolvable:$true] %s268_s21 }
  0x16   :  { %119 = vmatpush.msra.mxu0 %v88_v1  ;;  %v130_v8 = vld [vmem:[#allocation8] sm:$0xff]  ;;  %v300_v9 = vld [vmem:[%s514_s3] ss:$0 sm:$0xff]  ;;  %s445_s3 = smov [#allocation10]  }
  0x17   :  { %158 = vmatpush.msra.mxu1 %v132_v6  ;;  %289 = vmatpush.msra.mxu3 %v132_v6  ;;  %v301_v16 = vld [vmem:[%s516_s5] ss:$0 sm:$0xff]  ;;  %v236_v47 = vld [vmem:[#allocation5] sm:$0x1]  ;;  %vm252_vm11 = vcmp.eq.s32.totalorder %v251_v60, 0  ;;  %vm256_vm12 = vcmp.eq.s32.totalorder %v251_v60, 1 }
  0x18   :  { %120 = vmatpush.msra.mxu0 %v87_v3  ;;  %vm237_vm10 = vcmp.eq.s32.totalorder %v236_v47, 1  ;;  %s266_s5 = sshll.u32 %s445_s3, 4  ;;  %s267_s5 = int_to_ptr.vmem [resolvable:$true] %s266_s5 }
  0x19   :  { %281 = vmatmul.msk.f32.vlgmr.msra.gmra.mxu0 %vm94_vm1, %v85_v4  ;;  %159 = vmatpush.msra.mxu1 %v131_v7  ;;  %v287_v52 = vsel %vm237_vm10, 1.0, %v444_v51 }
  0x1a   :  { %290 = vmatpush.msra.mxu3 %v131_v7  ;;  %v241_v53 = vperm.slane %v287_v52, 0 }
  0x1b   :  { %160 = vmatpush.msra.mxu1 %v130_v8 }
  0x1c   :  { %291 = vmatpush.msra.mxu3 %v130_v8 }
  0x21   :  { %282 = vmatmul.msk.f32.gmra.mxu0 %vm94_vm1, %v86_v5 }
  0x96   :  { %v122_v10 = vpop.f32.mrf.mxu0 }
  0x97   :  { %v123_v11 = vadd.f32 %v300_v9, %v122_v10 }
  0x99   :  { %v128_v12 = vmax.f32 %v123_v11, 0.0 }
  0x9b   :  { %283 = vmatmul.msk.f32.vlgmr.msra.gmra.mxu1 %vm138_vm2, %v128_v12 }
  0x9e   :  { %v125_v13 = vpop.f32.mrf.mxu0 }
  0x9f   :  { %v126_v14 = vadd.f32 %v300_v9, %v125_v13 }
  0xa1   :  { %v129_v15 = vmax.f32 %v126_v14, 0.0 }
  0xa3   :  { %284 = vmatmul.msk.f32.vlgmr.msra.gmra.mxu3 %vm138_vm2, %v129_v15 }
 0x118   :  { %v162_v19 = vpop.f32.mrf.mxu1 }
 0x119   :  { %v163_v21 = vadd.f32 %v301_v16, %v162_v19 }
 0x11b   :  { %v168_v23 = vmul.f32 %v163_v21, %v163_v21 }
 0x11d   :  { %v170_v24 = vsel %vm138_vm2, %v168_v23, 0.0 }
 0x126   :  { %v165_v17 = vpop.f32.mrf.mxu3 }
 0x127   :  { %v166_v18 = vadd.f32 %v301_v16, %v165_v17 }
 0x129   :  { %v169_v20 = vmul.f32 %v166_v18, %v166_v18 }
 0x12b   :  { %v173_v22 = vsel %vm138_vm2, %v169_v20, 0.0 }
 0x12c   :  { %174 = vadd.xlane.f32.xlu0 %v173_v22 }
 0x134   :  { %171 = vadd.xlane.f32.xlu0 %v170_v24 }
 0x19f   :  { %v175_v25 = vpop.xlane.xlu0 %174 }
 0x1a0   :  { %v177_v26 = vmax.f32 %v175_v25, 1e-16 }
 0x1a2   :  { %302 = vrsqrt.f32 %v177_v26  ;;  %vm194_vm4 = vweird.f32 %v177_v26 }
 0x1a7   :  { %v172_v27 = vpop.xlane.xlu0 %171 }
 0x1a8   :  { %v303_v28 = vpop.eup %302  ;;  %v176_v29 = vmax.f32 %v172_v27, 1e-16 }
 0x1a9   :  { %v189_v30 = vmul.f32 %v303_v28, %v177_v26  ;;  %vm195_vm3 = vweird.f32 %v303_v28 }
 0x1aa   :  { %304 = vrsqrt.f32 %v176_v29  ;;  %vm196_vm5 = vmor %vm194_vm4, %vm195_vm3  ;;  %vm184_vm7 = vweird.f32 %v176_v29 }
 0x1ab   :  { %v190_v31 = vmul.f32 %v303_v28, %v189_v30 }
 0x1ad   :  { %v191_v32 = vmul.f32 0.5, %v190_v31 }
 0x1af   :  { %v192_v33 = vsub.f32 1.5, %v191_v32 }
 0x1b0   :  { %v305_v34 = vpop.eup %304 }
 0x1b1   :  { %v179_v35 = vmul.f32 %v305_v34, %v176_v29  ;;  %v193_v36 = vmul.f32 %v303_v28, %v192_v33  ;;  %vm185_vm6 = vweird.f32 %v305_v34 }
 0x1b2   :  { %vm186_vm8 = vmor %vm184_vm7, %vm185_vm6 }
 0x1b3   :  { %v180_v37 = vmul.f32 %v305_v34, %v179_v35  ;;  %v197_v38 = vsel %vm196_vm5, %v303_v28, %v193_v36 }
 0x1b4   :  { %v199_v39 = vmul.f32 %v197_v38, %v166_v18 }
 0x1b5   :  { %v181_v40 = vmul.f32 0.5, %v180_v37 }
 0x1b6   :  { %285 = vmatpush.xpose.msk.msra.mxu2 %vm138_vm2, %v199_v39 }
 0x1b7   :  { %v182_v41 = vsub.f32 1.5, %v181_v40 }
 0x1b9   :  { %v183_v42 = vmul.f32 %v305_v34, %v182_v41 }
 0x1bb   :  { %v187_v43 = vsel %vm186_vm8, %v305_v34, %v183_v42 }
 0x1bc   :  { %v198_v44 = vmul.f32 %v187_v43, %v163_v21 }
 0x1be   :  { %286 = vmatmul.msk.f32.vlgmr.msra.gmra.mxu2 %vm138_vm2, %v198_v44 }
 0x241   :  { %v223_v45 = vpop.f32.mrf.mxu2 }
 0x242   :  { %v227_v46 = vsel %vm226_vm9, %v223_v45, -inf }
 0x243   :  { %228 = vmax.xlane.f32.xlu1 %v227_v46 }
 0x2b6   :  { %v229_v48 = vpop.xlane.xlu1 %228 }
 0x2b7   :  { %v230_v49 = vsub.f32 %v223_v45, %v229_v48 }
 0x2b9   :  { %v231_v50 = vmul.f32 1.442695, %v230_v49 }
 0x2bb   :  { %306 = vpow2.f32 %v231_v50 }
 0x2c1   :  { %v307_v54 = vpop.eup %306 }
 0x2c2   :  { %v233_v55 = vsel %vm226_vm9, %v307_v54, 0.0  ;;  %v243_v56 = vmul.f32 %v307_v54, %v241_v53 }
 0x2c3   :  { %234 = vadd.xlane.f32.xlu1 %v233_v55 }
 0x2c4   :  { %v244_v57 = vsel %vm226_vm9, %v243_v56, 0.0 }
 0x2c5   :  { %245 = vadd.xlane.f32.xlu2 %v244_v57 }
 0x336   :  { %v235_v59 = vpop.xlane.xlu1 %234 }
 0x337   :  { %308 = vrcp.f32 %v235_v59 }
 0x338   :  { %v246_v61 = vpop.xlane.xlu2 %245 }
 0x339   :  { %v248_v62 = vsub.f32 %v235_v59, %v246_v61 }
 0x33d   :  { %v309_v63 = vpop.eup %308 }
 0x33e   :  { %v253_v0 = vmul.f32 %v309_v63, %v248_v62  ;;  %v257_v1 = vmul.f32 %v309_v63, %v246_v61 }
 0x340   :  { %v254_v2 = vsel %vm252_vm11, %v253_v0, 0.0  ;;  %v258_v3 = vsel %vm256_vm12, %v257_v1, 0.0 }
 0x341   :  { %v259_v4 = vadd.f32 %v258_v3, %v254_v2 }
 0x343   :  { %260 = vst [vmem:[#allocation10] sm:$0xff] %v259_v4 }
 0x344   :  { %271 = dma.vmem_to_hbm [thread:$0]  %s267_s5, 128, %s269_s21, [#allocation4]  }
 0x345   :  { %436 = dma.done.wait [#allocation4], 128  }
 0x346   :  { %437 = vsyncadd [#allocation4], 4294967168 }
 0x347   :  { %276 = vsyncpa [#allocation3], 1 }
 0x348   :  { %277 = vsyncpa [#allocation6], 1 }
 0x349   :  { %278 = vsyncpa [#allocation9], 1 }
 0x34a   :  { %279 = vsyncpa [#allocation4], 1 }

</bundles_post_ra>
